<compile_context>
chip_gen: v7x
topology: tpu7x:2x2x1
jax: 0.10.0
libtpu: 0.0.40
codegen_flags: <defaults>
</compile_context>

<pallas_src>
import math

import jax
import jax.numpy as jnp
from jax.experimental import pallas as pl
from jax.experimental.pallas import tpu as pltpu

_SHIFT = math.log(2.0)


def _shifted_softplus_kernel(x_ref, o_ref):
    # Upcast to f32 in vregs (VPU/EUP slack is free for a mem-bound op).
    x = x_ref[...].astype(jnp.float32)
    # Numerically stable softplus: max(x, 0) + log1p(exp(-|x|)).
    sp = jnp.maximum(x, 0.0) + jnp.log1p(jnp.exp(-jnp.abs(x)))
    o_ref[...] = (sp - _SHIFT).astype(o_ref.dtype)


def _choose_cols(n, sub):
    """Largest lane width in {1024,512,256,128} dividing n; pad only if none do.

    Among dividing widths, prefer the largest that still leaves enough rows
    (>= 2*sub) for at least two properly-tiled grid steps (pipelining +
    v7x megacore); tiny arrays just take the largest divisor.
    """
    divisors = [c for c in (1024, 512, 256, 128) if n % c == 0]
    if not divisors:
        return 128, True
    for c in divisors:
        if n // c >= 2 * sub:
            return c, False
    return divisors[0], False


def shifted_softplus(x, *, target_grid_steps=8, block_bytes=2 * 1024 * 1024):
    """Apply softplus(x) - log(2) elementwise via a Pallas TPU kernel."""
    orig_shape = x.shape
    dtype = x.dtype
    itemsize = jnp.dtype(dtype).itemsize
    n = x.size
    if n == 0:
        return x

    # Sublane granularity: 8 rows for 32-bit, 16 for bf16/fp16, 32 for 8-bit.
    sub = max(8, 8 * (4 // max(1, itemsize)))

    cols, needs_pad = _choose_cols(n, sub)
    rows = pl.cdiv(n, cols)
    padded_n = rows * cols

    x_flat = jnp.ravel(x)  # free: row-major reshape, no HBM pass
    if needs_pad:
        # Rare fallback (nothing in {1024,...,128} divides n); minimal pad.
        x_flat = jnp.pad(x_flat, (0, padded_n - n))
    x2d = x_flat.reshape(rows, cols)

    if rows <= sub:
        # Tiny array: single full-extent block (block dim == array dim is legal).
        br = rows
    else:
        # Aim for ~target_grid_steps steps, rounded to a sublane multiple,
        # capped by the ~2 MiB per-block byte budget (v5e-safe when
        # double-buffered for both input and output).
        br = max(sub, pl.cdiv(rows, target_grid_steps))
        br = ((br + sub - 1) // sub) * sub
        max_br = max(sub, (block_bytes // (cols * itemsize) // sub) * sub)
        br = min(br, max_br, (rows // sub) * sub)
    grid = (pl.cdiv(rows, br),)

    cost = pl.CostEstimate(
        flops=5 * padded_n,
        transcendentals=2 * padded_n,
        bytes_accessed=2 * padded_n * itemsize,
    )

    out2d = pl.pallas_call(
        _shifted_softplus_kernel,
        out_shape=jax.ShapeDtypeStruct((rows, cols), dtype),
        grid_spec=pltpu.PrefetchScalarGridSpec(
            num_scalar_prefetch=0,
            grid=grid,
            in_specs=[pl.BlockSpec((br, cols), lambda i: (i, 0))],
            out_specs=pl.BlockSpec((br, cols), lambda i: (i, 0)),
        ),
        compiler_params=pltpu.CompilerParams(
            dimension_semantics=("parallel",)
        ),
        cost_estimate=cost,
    )(x2d)

    out_flat = out2d.reshape(-1)
    if needs_pad:
        out_flat = out_flat[:n]
    return out_flat.reshape(orig_shape)


if __name__ == "__main__":
    key = jax.random.PRNGKey(0)
    x = jax.random.normal(key, (2, 4, 16, 16), dtype=jnp.float32) * 3.0

    y = shifted_softplus(x)
    jax.block_until_ready(y)

    # Reference check against plain-JAX softplus (f32 path).
    ref = jax.nn.softplus(x) - math.log(2.0)
    assert y.shape == x.shape, "shape mismatch"
    assert y.dtype == x.dtype, "dtype mismatch"
    assert jnp.allclose(y, ref, atol=1e-5, rtol=1e-5), "mismatch vs reference (f32)"

    # Native bf16 path: kernel DMAs bf16, upcasts in-register, stores bf16.
    x_bf16 = x.astype(jnp.bfloat16)
    y_bf16 = shifted_softplus(x_bf16)
    jax.block_until_ready(y_bf16)
    ref_bf16 = jax.nn.softplus(x_bf16.astype(jnp.float32)) - math.log(2.0)
    assert y_bf16.dtype == jnp.bfloat16, "bf16 dtype mismatch"
    assert jnp.allclose(
        y_bf16.astype(jnp.float32), ref_bf16, atol=1e-2, rtol=1e-2
    ), "mismatch vs reference (bf16)"

    # Awkward size (nothing in {1024,...,128} divides 105): exercises the
    # minimal-padding fallback path.
    x_odd = jax.random.normal(jax.random.PRNGKey(1), (3, 5, 7), dtype=jnp.float32)
    y_odd = shifted_softplus(x_odd)
    jax.block_until_ready(y_odd)
    ref_odd = jax.nn.softplus(x_odd) - math.log(2.0)
    assert y_odd.shape == x_odd.shape, "odd-shape mismatch"
    assert jnp.allclose(y_odd, ref_odd, atol=1e-5, rtol=1e-5), "mismatch (odd size)"

    print("KERNEL_OK")
</pallas_src>

<mosaic_0001>
module attributes {stable_mosaic.version = 11 : i64} {
  func.func @_shifted_softplus_kernel(%arg0: i32, %arg1: memref<8x128xf32, #tpu.memory_space<vmem>>, %arg2: memref<8x128xf32, #tpu.memory_space<vmem>>) attributes {dimension_semantics = [#tpu.dimension_semantics<parallel>], iteration_bounds = array<i64: 2>, scalar_prefetch = 0 : i64, scratch_operands = 0 : i64, tpu.core_type = #tpu.core_type<tc>, window_params = [{transform_indices = @transform_0, window_bounds = array<i64: 8, 128>}, {transform_indices = @transform_1, window_bounds = array<i64: 8, 128>}]} {
    %c0 = arith.constant 0 : index
    %c0_0 = arith.constant 0 : index
    %0 = vector.load %arg1[%c0, %c0_0] : memref<8x128xf32, #tpu.memory_space<vmem>>, vector<8x128xf32>
    %cst = arith.constant 0.000000e+00 : f32
    %1 = vector.broadcast %cst : f32 to vector<8x128xf32>
    %2 = arith.maximumf %0, %1 : vector<8x128xf32>
    %3 = math.absf %0 : vector<8x128xf32>
    %cst_1 = arith.constant 0.000000e+00 : f32
    %4 = vector.broadcast %cst_1 : f32 to vector<8x128xf32>
    %5 = arith.subf %4, %3 : vector<8x128xf32>
    %6 = math.exp %5 : vector<8x128xf32>
    %7 = math.log1p %6 : vector<8x128xf32>
    %8 = arith.addf %2, %7 : vector<8x128xf32>
    %cst_2 = arith.constant 0.693147182 : f32
    %9 = vector.broadcast %cst_2 : f32 to vector<8x128xf32>
    %10 = arith.subf %8, %9 : vector<8x128xf32>
    %c0_3 = arith.constant 0 : index
    %c0_4 = arith.constant 0 : index
    %11 = vector.load %arg2[%c0_3, %c0_4] : memref<8x128xf32, #tpu.memory_space<vmem>>, vector<8x128xf32>
    tpu.vector_store %arg2[%c0_3, %c0_4], %10 {strides = array<i32>} : memref<8x128xf32, #tpu.memory_space<vmem>>, vector<8x128xf32>,
    return
  }
  func.func @transform_0(%arg0: i32) -> (i32, i32) {
    %c0_i32 = arith.constant 0 : i32
    %c0_i32_0 = arith.constant 0 : i32
    return %arg0, %c0_i32 : i32, i32
  }
  func.func @transform_1(%arg0: i32) -> (i32, i32) {
    %c0_i32 = arith.constant 0 : i32
    %c0_i32_0 = arith.constant 0 : i32
    return %arg0, %c0_i32 : i32, i32
  }
}

</mosaic_0001>

<bundles_post_ra>
// kernel: tpu_custom_call.1
= control target key start
LH: loop header
LB: loop body
LE: loop exit
PB: predicated region body
PF: predicated region fallthrough
CT: control target
= control target key end

     0   :  { %6 = vsyncpa [#allocation3], 0  ;;  %s568_s0 = inlined_call_operand.hbm [shape: f32[16,128], index: 0, kind: input, shape index: {}]   ;;  %s569_s1 = inlined_call_operand.hbm [shape: f32[16,128], index: 1, kind: output, shape index: {}]  }
   0x1   :  { %8 = vsyncpa [#allocation3 + $0x1], 0 }
   0x2   :  { %9 = vsyncpa [#allocation4], 0 }
   0x3   :  { %11 = vsyncpa [#allocation4 + $0x1], 0  ;;  %s407_s6 = smov 0   ;;  %s409_s7 = smov 0  }
   0x4   :  { %s411_s8 = smov 0   ;;  %s413_s9 = smov 0  }
   0x5 LB: > { %s428_s10 = sadd.s32 4294967295, %s393_s9   ;;  %s234_s11 = sadd.s32 4294967294, %s393_s9   ;;  %s393_s9 = sphi %s413_s9, %s584_s9   ;;  %s389_s8 = sphi %s411_s8, %s583_s8   ;;  %s385_s7 = sphi %s409_s7, %s582_s7   ;;  %s381_s6 = sphi %s407_s6, %s581_s6  }
   0x6   : > { %s432_s12 = sadd.s32 1, %s393_s9   ;;  %s24_s13 = sadd.s32 1, %s389_s8 }
   0x7   : > { %s21_s14 = ssub.s32 %s393_s9, %s432_s12  ;;  %p31_p0 = scmp.ne.s32.totalorder %s389_s8, %s385_s7 }
   0x8   : > { %p22_p1 = scmp.eq.s32.totalorder %s21_s14, 0  ;;  %p32_p2 = scmp.eq.s32.totalorder %s393_s9, 0 }
   0x9   : > { %p37_p3 = scmp.ne.s32.totalorder %s385_s7, %s381_s6  ;;  %p38_p4 = scmp.eq.s32.totalorder %s428_s10, 0 }
   0xa   : > { %s444_s15 = scalar_select %p22_p1, %s389_s8, %s24_s13  }
   0xb   : > { %p446_p5 = por %p32_p2, %p31_p0  ;;  %p450_p6 = por %p38_p4, %p37_p3 }
   0xc   : > { %p61_p7 = scmp.eq.s32.totalorder %s428_s10, 1  ;;  %p67_p8 = scmp.eq.s32.totalorder %s234_s11, 1 }
   0xd   : > { %p259_p10 = scmp.lt.s32.totalorder %s393_s9, 2  ;;  %s87_s20 = sand.u32 1, %s389_s8  }
   0xe   : > { %p457_p11 = por %p61_p7, %p31_p0  ;;  %p461_p12 = por %p67_p8, %p37_p3 }
   0xf   : > { %s238_s21 = sshll.u32 %s393_s9, 7  ;;  %s237_s22 = sshll.u32 %s87_s20, 3 }
  0x10   : > { %s573_s18 = scalar_select %p457_p11, 1, 0 }
  0x11   : > { %s574_s19 = scalar_select %p461_p12, 1, 0 }
  0x12   : > { %s470_s25 = scalar_lea.hbm %s568_s0, %s238_s21  ;;  %s91_s26 = scalar_lea.vmem [#allocation2], %s237_s22 }
  0x13   : > { %s98_s27 = sshll.u32 %s91_s26, 4  ;;  %p474_p13 = pnand %p259_p10, %p446_p5  ;;  %s478_s27 = int_to_ptr.vmem [resolvable:$true] %s98_s27 }
  0x14   : > { %s88_s29 = scalar_lea.sflag [#allocation3], %s87_s20  ;;  %s297_s30 = scalar_lea.hbm %s470_s25, 128 }
  0x15   : > { %p298_p2 = scmp.ne.s32.totalorder %s470_s25, %s297_s30  ;;  %p299_p3 = pneg %p474_p13 }
  0x16   : > { %s302_s4 = scalar_lea.hbm %s568_s0, 256  ;;  %p303_p5 = scmp.lt.u32.totalorder %s470_s25, %s568_s0 }
  0x17   : > { %p300_p4 = pnand %p299_p3, %p298_p2  ;;  %p304_p8 = scmp.lt.u32.totalorder %s302_s4, %s297_s30 }
  0x18   : > { %p306_p9 = scmp.lt.u32.totalorder %s297_s30, %s470_s25 }
  0x19   : > { %p301_p7 = pneg %p300_p4  ;;  %p305_p10 = por %p304_p8, %p303_p5 }
  0x1b   : > { %p307_p0 = por %p306_p9, %p305_p10 }
  0x1d   : > { %p308_p1 = pnand %p307_p0, %p301_p7 }
  0x1f   : > { %311 = shalt.err (!%p308_p1)
}
  0x20   : > { %s312_s13 = scalar_lea.vmem %s478_s27, 128  ;;  %s395_s14 = smov [#allocation2]  }
  0x21   : > { %p313_p2 = scmp.ne.s32.totalorder %s478_s27, %s312_s13  ;;  %s317_s16 = sshll.u32 %s395_s14, 4  ;;  %s318_s16 = int_to_ptr.vmem [resolvable:$false] %s317_s16 }
  0x22   : > { %s319_s20 = scalar_lea.vmem %s318_s16, 256  ;;  %p320_p11 = scmp.lt.s32.totalorder %s478_s27, %s318_s16 }
  0x23   : > { %p315_p4 = pnand %p313_p2, %p299_p3  ;;  %p321_p5 = scmp.lt.s32.totalorder %s319_s20, %s312_s13 }
  0x25   : > { %p316_p12 = pneg %p315_p4  ;;  %p322_p8 = por %p321_p5, %p320_p11 }
  0x27   : > { %p323_p9 = pnand %p322_p8, %p316_p12 }
  0x29   : > { %326 = shalt.err (!%p323_p9)
}
  0x2a   : > { %254 = dma.hbm_to_vmem [thread:$0]  (!%p474_p13), %s470_s25, 128, %s478_s27, %s88_s29  }
  0x2b   : > { %p576_p0 = scmp.lt.s32.totalorder %s393_s9, 3  ;;  %p577_p1 = scmp.ge.s32.totalorder %s393_s9, 1 }
  0x2d   : > { %p104_p3 = pnand %p577_p1, %p576_p0 }
  0x2e   : > { %s512_s21 = sand.u32 (!%p104_p3), 1, %s385_s7  }
  0x2f   : > { %107 = sbr.rel (%p104_p3) target bundleno = 107 (0x6b), region = 24  ;;  %s240_s22 = sshll.u32 (!%p104_p3), %s512_s21, 3 }
  0x30   : > { %s110_s23 = scalar_lea.sflag (!%p104_p3), [#allocation3], %s512_s21  ;;  %s113_s24 = scalar_lea.vmem (!%p104_p3), [#allocation2], %s240_s22 }
  0x36   : > { %372 = dma.done.wait (%p450_p6), %s110_s23, 128  }
  0x37   : > { %374 = vsyncadd (%p450_p6), %s110_s23, 4294967168  ;;  %v132_v0 = vld [vmem:[%s113_s24] sm:$0xff]  ;;  %s131_s17 = scalar_lea.vmem [#allocation5], %s240_s22  ;;  %s244_s26 = sshll.u32 %s428_s10, 7 }
  0x38   : > { %v134_v1 = vand.u32 2147483647, %v132_v0  ;;  %v133_v11 = vmax.f32 %v132_v0, 0.0  ;;  %s164_s25 = sshll.u32 %s131_s17, 4  ;;  %s526_s29 = scalar_lea.hbm %s569_s1, %s244_s26  ;;  %s521_s25 = int_to_ptr.vmem [resolvable:$true] %s164_s25 }
  0x39   : > { %s151_s30 = scalar_lea.sflag [#allocation4], %s512_s21  ;;  %s327_s2 = scalar_lea.vmem %s521_s25, 128 }
  0x3a   : > { %v135_v2 = vsub.f32 0.0, %v134_v1  ;;  %p328_p6 = scmp.ne.s32.totalorder %s521_s25, %s327_s2  ;;  %p578_p11 = scmp.ne.s32.totalorder %s573_s18, 0 }
  0x3b   : > { %s396_s10 = smov [#allocation5]  }
  0x3c   : > { %v136_v3 = vmul.f32 1.442695, %v135_v2  ;;  %p329_p12 = pnand %p328_p6, %p578_p11  ;;  %s331_s3 = sshll.u32 %s396_s10, 4  ;;  %s332_s3 = int_to_ptr.vmem [resolvable:$false] %s331_s3 }
  0x3d   : > { %s333_s4 = scalar_lea.vmem %s332_s3, 256  ;;  %p334_p7 = scmp.lt.s32.totalorder %s521_s25, %s332_s3 }
  0x3e   : > { %293 = vpow2.f32 %v136_v3  ;;  %p330_p13 = pneg %p329_p12  ;;  %p335_p10 = scmp.lt.s32.totalorder %s333_s4, %s327_s2 }
  0x40   : > { %p336_p2 = por %p335_p10, %p334_p7 }
  0x42   : > { %p337_p4 = pnand %p336_p2, %p330_p13 }
  0x48   : > { %v294_v4 = vpop.eup %293 }
  0x49   : > { %v138_v5 = vadd.f32 1.0, %v294_v4  ;;  %v141_v6 = vmul.f32 -0.5, %v294_v4  ;;  %v144_v8 = vand.u32 2147483647, %v294_v4 }
  0x4b   : > { %295 = vlog2.f32 %v138_v5  ;;  %v142_v7 = vadd.f32 1.0, %v141_v6  ;;  %vm145_vm0 = vcmp.lt.f32.partialorder %v144_v8, 0.0004427343 }
  0x4d   : > { %v143_v9 = vmul.f32 %v294_v4, %v142_v7 }
  0x55   : > { %v296_v10 = vpop.eup %295 }
  0x56   : > { %v140_v12 = vmul.f32 0.6931472, %v296_v10 }
  0x58   : > { %v146_v13 = vsel %vm145_vm0, %v143_v9, %v140_v12 }
  0x59   : > { %v147_v14 = vadd.f32 %v146_v13, %v133_v11 }
  0x5b   : > { %v242_v15 = vadd.f32 -0.6931472, %v147_v14 }
  0x5d   : > { %149 = vst [vmem:[%s131_s17] sm:$0xff] %v242_v15 }
  0x5e   : > { %340 = shalt.err (!%p337_p4)
}
  0x5f   : > { %s341_s5 = scalar_lea.hbm %s526_s29, 128  ;;  %s345_s14 = scalar_lea.hbm %s569_s1, 256 }
  0x60   : > { %p342_p5 = scmp.ne.s32.totalorder %s526_s29, %s341_s5  ;;  %p346_p0 = scmp.lt.u32.totalorder %s526_s29, %s569_s1 }
  0x61   : > { %p347_p1 = scmp.lt.u32.totalorder %s345_s14, %s341_s5  ;;  %p349_p6 = scmp.lt.u32.totalorder %s341_s5, %s526_s29 }
  0x62   : > { %p343_p8 = pnand %p342_p5, %p578_p11 }
  0x63   : > { %p348_p3 = por %p347_p1, %p346_p0 }
  0x64   : > { %p344_p9 = pneg %p343_p8 }
  0x65   : > { %p350_p12 = por %p349_p6, %p348_p3 }
  0x67   : > { %p351_p13 = pnand %p350_p12, %p344_p9 }
  0x69   : > { %354 = shalt.err (!%p351_p13)
}
  0x6a   : > { %249 = dma.vmem_to_hbm [thread:$0]  (%p578_p11), %s521_s25, 128, %s526_s29, %s151_s30  }
  0x6b PF: > { %s176_s21 = sand.u32 1, %s381_s6   ;;  %p579_p7 = scmp.ne.s32.totalorder %s574_s19, 0 }
  0x6c   : > { %p580_p10 = scmp.ge.s32.totalorder %s393_s9, 2  ;;  %s177_s22 = scalar_lea.sflag [#allocation4], %s176_s21 }
  0x6e   : > { %p256_p2 = pnand %p580_p10, %p579_p7 }
  0x70   : > { %376 = dma.done.wait (!%p256_p2), %s177_s22, 128  }
  0x71   : > { %378 = vsyncadd (!%p256_p2), %s177_s22, 4294967168  ;;  %p14_p4 = scmp.ge.s32.totalorder %s432_s12, 4   ;;  %s581_s6 = smov %s385_s7 }
  0x72   : > { %s582_s7 = smov %s389_s8  ;;  %s583_s8 = smov %s444_s15 }
  0x73   : > { %s584_s9 = smov %s432_s12  ;;  %16 = sbr.rel (!%p14_p4) target bundleno = 5 (0x5), region = 69 }
  0x7a   :  { %182 = vsyncpa [#allocation3], 1 }
  0x7b   :  { %184 = vsyncpa [#allocation3 + $0x1], 1 }
  0x7c   :  { %185 = vsyncpa [#allocation4], 1 }
  0x7d   :  { %187 = vsyncpa [#allocation4 + $0x1], 1 }

</bundles_post_ra>
